<compile_context>
chip_gen: v7x
topology: tpu7x:2x2x1
jax: 0.10.0
libtpu: 0.0.40
codegen_flags: <defaults>
</compile_context>

<pallas_src>
import math

import jax
import jax.numpy as jnp
from jax.experimental import pallas as pl
from jax.experimental.pallas import tpu as pltpu

_LANES = 128
_XLA_BYPASS_ELEMS = 65536   # below this a fused XLA multiply beats pallas_call overhead
_SUBLANE_ROUND = 32         # lcm of sublane packing (8 f32 / 16 bf16 / 32 int8)


def _round_up(x, m):
    return ((x + m - 1) // m) * m


def _vmem_budget_and_limit():
    """Generation-aware double-buffered working-set budget and scoped-VMEM limit."""
    try:
        cap = int(getattr(pltpu.get_tpu_info(), "vmem_capacity_bytes", 0))
    except Exception:
        cap = 0
    if cap >= 128 * 1024 * 1024:                  # v5e / v6e: 128 MiB physical VMEM
        return 24 * 1024 * 1024, 64 * 1024 * 1024
    return 12 * 1024 * 1024, 32 * 1024 * 1024     # v7x (64 MiB) or unknown: conservative


def _row_tiling(rows, bytes_per_row, budget_bytes):
    """Sublane-aligned row tile that fits the budget; >= 4 grid steps when big
    enough so both v7x TensorCores keep double-buffering."""
    target_rows = max(
        _SUBLANE_ROUND,
        (budget_bytes // (2 * bytes_per_row)) // _SUBLANE_ROUND * _SUBLANE_ROUND,
    )
    if rows > target_rows:
        row_tile = target_rows
    elif rows >= 1024:
        row_tile = min(target_rows, _round_up(pl.cdiv(rows, 4), _SUBLANE_ROUND))
    else:
        row_tile = rows
    return row_tile, (pl.cdiv(rows, row_tile),)


def _qmul_dense_kernel(a_ref, b_ref, o_ref):
    # Cast-on-load (VPU) + multiply.  b_ref may be (rt, 128) or (rt, 1); jnp
    # broadcasting handles the lane-broadcast for the per-row (channel) path.
    o_ref[...] = a_ref[...].astype(o_ref.dtype) * b_ref[...].astype(o_ref.dtype)


def _qmul_scalar_kernel(a_ref, s_ref, o_ref):
    # s_ref is a (1,) SMEM ref: read as a scalar, direct vector x scalar multiply.
    s = s_ref[0].astype(o_ref.dtype)
    o_ref[...] = a_ref[...].astype(o_ref.dtype) * s


def qmul(x_left, x_right) -> jax.Array:
    """Pallas implementation of QMul.forward: out = x_left * x_right."""
    a = jnp.asarray(x_left)
    b = jnp.asarray(x_right)

    # Exact JAX multiply semantics for shape / dtype (handles weak types).
    out_aval = jax.eval_shape(jnp.multiply, a, b)
    out_shape, out_dtype = out_aval.shape, out_aval.dtype
    total = math.prod(out_shape)

    # Tiny / empty / lane-ragged sizes: a single fused XLA pass is optimal HBM
    # traffic; a pallas_call would add launch overhead or pad+slice round trips.
    if total < _XLA_BYPASS_ELEMS or total % _LANES != 0:
        # TODO(synk): a 1-D-block Pallas path could cover total % 128 != 0
        # without padding; rare for NN shapes, so delegate to XLA fusion here.
        return jnp.multiply(a, b)

    rows = total // _LANES
    budget, vmem_limit = _vmem_budget_and_limit()
    out_item = jnp.dtype(out_dtype).itemsize
    cparams = pltpu.CompilerParams(
        dimension_semantics=("parallel",), vmem_limit_bytes=vmem_limit
    )

    # ---------------- dense: both operands already have `total` elements -------
    if a.size == total and b.size == total:
        a_slab = a.reshape(rows, _LANES)
        b_slab = b.reshape(rows, _LANES)
        bytes_per_row = _LANES * (a.dtype.itemsize + b.dtype.itemsize + out_item)
        row_tile, grid = _row_tiling(rows, bytes_per_row, budget)
        block = pl.BlockSpec((row_tile, _LANES), lambda i: (i, 0))
        out2d = pl.pallas_call(
            _qmul_dense_kernel,
            out_shape=jax.ShapeDtypeStruct((rows, _LANES), out_dtype),
            grid=grid,
            in_specs=[block, block],
            out_specs=block,
            compiler_params=cparams,
        )(a_slab, b_slab)
        return out2d.reshape(out_shape)

    # ---------------- one dense operand + one broadcasting operand -------------
    if a.size == total or b.size == total:
        dense_op, small_op = (a, b) if a.size == total else (b, a)  # mul is commutative
        a_slab = dense_op.reshape(rows, _LANES)

        if small_op.size == 1:
            # Per-tensor scale through SMEM (exact: out_dtype round-trips via f32/i32).
            smem_dtype = (
                jnp.float32 if jnp.issubdtype(out_dtype, jnp.floating) else jnp.int32
            )
            s = small_op.reshape(()).astype(out_dtype).astype(smem_dtype).reshape(1)
            bytes_per_row = _LANES * (dense_op.dtype.itemsize + out_item)
            row_tile, grid = _row_tiling(rows, bytes_per_row, budget)
            block = pl.BlockSpec((row_tile, _LANES), lambda i: (i, 0))
            out2d = pl.pallas_call(
                _qmul_scalar_kernel,
                out_shape=jax.ShapeDtypeStruct((rows, _LANES), out_dtype),
                grid=grid,
                in_specs=[block, pl.BlockSpec(memory_space=pltpu.MemorySpace.SMEM)],
                out_specs=block,
                compiler_params=cparams,
            )(a_slab, s)
            return out2d.reshape(out_shape)

        # Channel / row-broadcast: small_op is constant over a trailing extent T
        # that is a multiple of 128 -> feed it as a (rows, 1) column (tiny HBM
        # footprint) and broadcast along lanes inside the kernel.
        ndim = len(out_shape)
        aligned = (1,) * (ndim - small_op.ndim) + tuple(small_op.shape)
        k = max(i for i, s in enumerate(aligned) if s > 1)
        t = math.prod(out_shape[k + 1:])
        if t >= _LANES and t % _LANES == 0:
            g = total // t
            b_groups = jnp.broadcast_to(
                small_op.reshape(aligned[: k + 1]), out_shape[: k + 1]
            ).reshape(g)
            b_rows = jnp.repeat(b_groups, t // _LANES).reshape(rows, 1)
            bytes_per_row = _LANES * (
                dense_op.dtype.itemsize + out_item + b_rows.dtype.itemsize
            )
            row_tile, grid = _row_tiling(rows, bytes_per_row, budget)
            block = pl.BlockSpec((row_tile, _LANES), lambda i: (i, 0))
            col = pl.BlockSpec((row_tile, 1), lambda i: (i, 0))
            out2d = pl.pallas_call(
                _qmul_dense_kernel,
                out_shape=jax.ShapeDtypeStruct((rows, _LANES), out_dtype),
                grid=grid,
                in_specs=[block, col],
                out_specs=block,
                compiler_params=cparams,
            )(a_slab, b_rows)
            return out2d.reshape(out_shape)

    # Unstructured broadcast: let XLA fuse it in one pass (no extra HBM traffic).
    # TODO(synk): BlockSpec-driven tiling for arbitrary N-D broadcast patterns.
    return jnp.multiply(a, b)


if __name__ == "__main__":
    key = jax.random.PRNGKey(0)
    k1, k2, k3 = jax.random.split(key, 3)

    big = (2, 4, 128, 128)   # 131072 elements -> exercises the Pallas slab paths
    small = (2, 4, 16, 16)   # 2048 elements   -> exercises the tiny-input XLA bypass

    x = jax.random.normal(k1, big, dtype=jnp.float32)
    y = jax.random.normal(k2, big, dtype=jnp.bfloat16)  # mixed dtype: cast-on-load in kernel

    # 1) dense equal-shape path (with in-kernel promotion bf16 -> f32)
    out = qmul(x, y)
    jax.block_until_ready(out)
    ref = x * y
    assert out.shape == ref.shape and out.dtype == ref.dtype
    assert jnp.array_equal(out, ref)

    # 2) per-tensor quantization scale (scalar through SMEM)
    scale = jnp.float32(0.125)
    out_s = qmul(x, scale)
    jax.block_until_ready(out_s)
    ref_s = x * scale
    assert out_s.shape == ref_s.shape and out_s.dtype == ref_s.dtype
    assert jnp.array_equal(out_s, ref_s)

    # 3) per-channel scale (1, C, 1, 1): BlockSpec-driven row broadcast
    ch_scale = jax.random.normal(k3, (1, 4, 1, 1), dtype=jnp.float32)
    out_c = qmul(x, ch_scale)
    jax.block_until_ready(out_c)
    ref_c = x * ch_scale
    assert out_c.shape == ref_c.shape and out_c.dtype == ref_c.dtype
    assert jnp.array_equal(out_c, ref_c)

    # 4) tiny-input bypass (fused XLA multiply)
    xs = jax.random.normal(k1, small, dtype=jnp.float32)
    ys = jax.random.normal(k2, small, dtype=jnp.float32)
    out_t = qmul(xs, ys)
    jax.block_until_ready(out_t)
    assert jnp.array_equal(out_t, xs * ys)

    print("KERNEL_OK")
</pallas_src>

<mosaic_0001>
module attributes {stable_mosaic.version = 11 : i64} {
  func.func @_qmul_dense_kernel(%arg0: i32, %arg1: memref<256x128xf32, #tpu.memory_space<vmem>>, %arg2: memref<256x128xbf16, #tpu.memory_space<vmem>>, %arg3: memref<256x128xf32, #tpu.memory_space<vmem>>) attributes {dimension_semantics = [#tpu.dimension_semantics<parallel>], iteration_bounds = array<i64: 4>, scalar_prefetch = 0 : i64, scratch_operands = 0 : i64, tpu.core_type = #tpu.core_type<tc>, window_params = [{transform_indices = @transform_0, window_bounds = array<i64: 256, 128>}, {transform_indices = @transform_1, window_bounds = array<i64: 256, 128>}, {transform_indices = @transform_2, window_bounds = array<i64: 256, 128>}]} {
    %c0 = arith.constant 0 : index
    %c0_0 = arith.constant 0 : index
    %0 = vector.load %arg1[%c0, %c0_0] : memref<256x128xf32, #tpu.memory_space<vmem>>, vector<256x128xf32>
    %c0_1 = arith.constant 0 : index
    %c0_2 = arith.constant 0 : index
    %1 = vector.load %arg2[%c0_1, %c0_2] : memref<256x128xbf16, #tpu.memory_space<vmem>>, vector<256x128xbf16>
    %2 = arith.extf %1 : vector<256x128xbf16> to vector<256x128xf32>
    %3 = arith.mulf %0, %2 : vector<256x128xf32>
    %c0_3 = arith.constant 0 : index
    %c0_4 = arith.constant 0 : index
    %4 = vector.load %arg3[%c0_3, %c0_4] : memref<256x128xf32, #tpu.memory_space<vmem>>, vector<256x128xf32>
    tpu.vector_store %arg3[%c0_3, %c0_4], %3 {strides = array<i32>} : memref<256x128xf32, #tpu.memory_space<vmem>>, vector<256x128xf32>,
    return
  }
  func.func @transform_0(%arg0: i32) -> (i32, i32) {
    %c0_i32 = arith.constant 0 : i32
    %c0_i32_0 = arith.constant 0 : i32
    return %arg0, %c0_i32 : i32, i32
  }
  func.func @transform_1(%arg0: i32) -> (i32, i32) {
    %c0_i32 = arith.constant 0 : i32
    %c0_i32_0 = arith.constant 0 : i32
    return %arg0, %c0_i32 : i32, i32
  }
  func.func @transform_2(%arg0: i32) -> (i32, i32) {
    %c0_i32 = arith.constant 0 : i32
    %c0_i32_0 = arith.constant 0 : i32
    return %arg0, %c0_i32 : i32, i32
  }
}

</mosaic_0001>

<bundles_post_ra>
// kernel: tpu_custom_call.1
= control target key start
LH: loop header
LB: loop body
LE: loop exit
PB: predicated region body
PF: predicated region fallthrough
CT: control target
= control target key end

     0   :  { %7 = vsyncpa [#allocation3], 0  ;;  %s1089_s0 = inlined_call_operand.hbm [shape: f32[1024,128], index: 0, kind: input, shape index: {}]   ;;  %s1090_s1 = inlined_call_operand.hbm [shape: bf16[1024,128], index: 1, kind: input, shape index: {}]   ;;  %s1091_s2 = inlined_call_operand.hbm [shape: f32[1024,128], index: 2, kind: output, shape index: {}]  }
   0x1   :  { %9 = vsyncpa [#allocation3 + $0x1], 0 }
   0x2   :  { %10 = vsyncpa [#allocation6], 0 }
   0x3   :  { %12 = vsyncpa [#allocation6 + $0x1], 0 }
   0x4   :  { %13 = vsyncpa [#allocation4], 0 }
   0x5   :  { %15 = vsyncpa [#allocation4 + $0x1], 0  ;;  %s788_s9 = smov 0   ;;  %s790_s10 = smov 0  }
   0x6   :  { %s792_s11 = smov 0   ;;  %s794_s12 = smov 0  }
   0x7 LB: > { %s809_s13 = sadd.s32 4294967295, %s762_s12   ;;  %s475_s14 = sadd.s32 4294967294, %s762_s12   ;;  %s762_s12 = sphi %s794_s12, %s1106_s12   ;;  %s758_s11 = sphi %s792_s11, %s1105_s11   ;;  %s754_s10 = sphi %s790_s10, %s1104_s10   ;;  %s750_s9 = sphi %s788_s9, %s1103_s9  }
   0x8   : > { %s813_s15 = sadd.s32 1, %s762_s12   ;;  %s28_s16 = sadd.s32 1, %s758_s11 }
   0x9   : > { %s25_s17 = ssub.s32 %s762_s12, %s813_s15  ;;  %p35_p0 = scmp.ne.s32.totalorder %s758_s11, %s754_s10 }
   0xa   : > { %p26_p1 = scmp.eq.s32.totalorder %s25_s17, 0  ;;  %p36_p2 = scmp.eq.s32.totalorder %s762_s12, 0 }
   0xb   : > { %p41_p3 = scmp.ne.s32.totalorder %s754_s10, %s750_s9  ;;  %p42_p4 = scmp.eq.s32.totalorder %s809_s13, 0 }
   0xc   : > { %s825_s18 = scalar_select %p26_p1, %s758_s11, %s28_s16  }
   0xd   : > { %p827_p5 = por %p36_p2, %p35_p0  ;;  %p831_p6 = por %p42_p4, %p41_p3 }
   0xe   : > { %p91_p7 = scmp.eq.s32.totalorder %s809_s13, 3  ;;  %p97_p8 = scmp.eq.s32.totalorder %s475_s14, 3 }
   0xf   : > { %s1095_s20 = scalar_select %p831_p6, 1, 0 }
  0x10   : > { %p592_p9 = scmp.lt.s32.totalorder %s762_s12, 4  ;;  %p837_p10 = por %p91_p7, %p35_p0 }
  0x11   : > { %p841_p11 = por %p97_p8, %p41_p3  ;;  %s846_s23 = sand.u32 1, %s758_s11  }
  0x12   : > { %s1096_s21 = scalar_select %p837_p10, 1, 0 }
  0x13   : > { %s1097_s22 = scalar_select %p841_p11, 1, 0 }
  0x14   : > { %s493_s24 = sshll.u32 %s762_s12, 12  ;;  %s478_s25 = sshll.u32 %s846_s23, 8 }
  0x15   : > { %s853_s28 = scalar_lea.hbm %s1089_s0, %s493_s24  ;;  %s121_s29 = scalar_lea.vmem [#allocation2], %s478_s25 }
  0x16   : > { %s128_s30 = sshll.u32 %s121_s29, 4  ;;  %p857_p12 = pnand %p592_p9, %p827_p5  ;;  %s861_s30 = int_to_ptr.vmem [resolvable:$true] %s128_s30 }
  0x17   : > { %s118_s4 = scalar_lea.sflag [#allocation3], %s846_s23  ;;  %s632_s5 = scalar_lea.hbm %s853_s28, 4096 }
  0x18   : > { %p633_p13 = scmp.ne.s32.totalorder %s853_s28, %s632_s5  ;;  %p634_p0 = pneg %p857_p12 }
  0x19   : > { %s637_s8 = scalar_lea.hbm %s1089_s0, 16384  ;;  %p638_p3 = scmp.lt.u32.totalorder %s853_s28, %s1089_s0 }
  0x1a   : > { %p635_p1 = pnand %p634_p0, %p633_p13  ;;  %p639_p4 = scmp.lt.u32.totalorder %s637_s8, %s632_s5 }
  0x1b   : > { %p641_p7 = scmp.lt.u32.totalorder %s632_s5, %s853_s28 }
  0x1c   : > { %p636_p2 = pneg %p635_p1  ;;  %p640_p5 = por %p639_p4, %p638_p3 }
  0x1e   : > { %p642_p8 = por %p641_p7, %p640_p5 }
  0x20   : > { %p643_p9 = pnand %p642_p8, %p636_p2 }
  0x22   : > { %646 = shalt.err (!%p643_p9)
}
  0x23   : > { %s647_s17 = scalar_lea.vmem %s861_s30, 4096  ;;  %s764_s19 = smov [#allocation2]  }
  0x24   : > { %p648_p13 = scmp.ne.s32.totalorder %s861_s30, %s647_s17  ;;  %s652_s24 = sshll.u32 %s764_s19, 4  ;;  %s653_s24 = int_to_ptr.vmem [resolvable:$false] %s652_s24 }
  0x25   : > { %s654_s25 = scalar_lea.vmem %s653_s24, 8192  ;;  %p655_p10 = scmp.lt.s32.totalorder %s861_s30, %s653_s24 }
  0x26   : > { %p650_p1 = pnand %p648_p13, %p634_p0  ;;  %p656_p3 = scmp.lt.s32.totalorder %s654_s25, %s647_s17 }
  0x28   : > { %p651_p11 = pneg %p650_p1  ;;  %p657_p4 = por %p656_p3, %p655_p10 }
  0x2a   : > { %p658_p5 = pnand %p657_p4, %p651_p11 }
  0x2c   : > { %661 = shalt.err (!%p658_p5)
}
  0x2d   : > { %s765_s26 = smov 128   ;;  %s766_s27 = smov 8  }
  0x2e   : > { %584 = dma.hbm_to_vmem [thread:$0]  (!%p857_p12), %s853_s28, 4096, %s861_s30, %s118_s4, %s765_s26, %s765_s26, %s766_s27  }
  0x2f   : > { %p484_p2 = scmp.ge.s32.totalorder %s762_s12, 1  ;;  %p157_p7 = scmp.lt.s32.totalorder %s762_s12, 5 }
  0x30   : > { %s481_s29 = sshll.u32 %s846_s23, 7  ;;  %s494_s6 = sshll.u32 %s762_s12, 11 }
  0x31   : > { %p894_p10 = pnand %p484_p2, %p157_p7  ;;  %s142_s7 = scalar_lea.vmem [#allocation5], %s481_s29 }
  0x32   : > { %s149_s8 = sshll.u32 %s142_s7, 4  ;;  %s902_s17 = scalar_lea.hbm %s1090_s1, %s494_s6  ;;  %s904_s8 = int_to_ptr.vmem [resolvable:$true] %s149_s8 }
  0x33   : > { %s139_s28 = scalar_lea.sflag [#allocation6], %s846_s23  ;;  %s662_s30 = scalar_lea.hbm %s902_s17, 2048 }
  0x34   : > { %p663_p11 = scmp.ne.s32.totalorder %s902_s17, %s662_s30  ;;  %s667_s24 = scalar_lea.hbm %s1090_s1, 8192 }
  0x35   : > { %p668_p13 = scmp.lt.u32.totalorder %s902_s17, %s1090_s1  ;;  %p669_p1 = scmp.lt.u32.totalorder %s667_s24, %s662_s30 }
  0x36   : > { %p665_p8 = pnand %p663_p11, %p634_p0  ;;  %p671_p4 = scmp.lt.u32.totalorder %s662_s30, %s902_s17 }
  0x37   : > { %p670_p3 = por %p669_p1, %p668_p13 }
  0x38   : > { %p666_p9 = pneg %p665_p8 }
  0x39   : > { %p672_p5 = por %p671_p4, %p670_p3 }
  0x3b   : > { %p673_p2 = pnand %p672_p5, %p666_p9 }
  0x3d   : > { %676 = shalt.err (!%p673_p2)
}
  0x3e   : > { %s677_s27 = scalar_lea.vmem %s904_s8, 2048  ;;  %s767_s29 = smov [#allocation5]  }
  0x3f   : > { %p678_p7 = scmp.ne.s32.totalorder %s904_s8, %s677_s27  ;;  %s682_s6 = sshll.u32 %s767_s29, 4  ;;  %s683_s6 = int_to_ptr.vmem [resolvable:$false] %s682_s6 }
  0x40   : > { %s684_s7 = scalar_lea.vmem %s683_s6, 4096  ;;  %p685_p6 = scmp.lt.s32.totalorder %s904_s8, %s683_s6 }
  0x41   : > { %p680_p11 = pnand %p678_p7, %p634_p0  ;;  %p686_p13 = scmp.lt.s32.totalorder %s684_s7, %s677_s27 }
  0x43   : > { %p681_p8 = pneg %p680_p11  ;;  %p687_p1 = por %p686_p13, %p685_p6 }
  0x45   : > { %p688_p3 = pnand %p687_p1, %p681_p8 }
  0x47   : > { %691 = shalt.err (!%p688_p3)
}
  0x48   : > { %s768_s14 = smov 64   ;;  %s769_s16 = smov 4  }
  0x49   : > { %587 = dma.hbm_to_vmem [thread:$0]  (!%p857_p12), %s902_s17, 2048, %s904_s8, %s139_s28, %s768_s14, %s768_s14, %s769_s16  }
  0x4a   : > { %161 = sbr.rel (%p894_p10) target bundleno = 123 (0x7b), region = 28  ;;  %s935_s30 = sand.u32 (!%p894_p10), 1, %s754_s10  }
  0x4b   : > { %s485_s4 = sshll.u32 (!%p894_p10), %s935_s30, 8  ;;  %s164_s19 = scalar_lea.sflag (!%p894_p10), [#allocation3], %s935_s30 }
  0x4c   : > { %s941_s24 = scalar_lea.vmem (!%p894_p10), [#allocation2], %s485_s4  ;;  %p1100_p6 = scmp.ne.s32.totalorder (!%p894_p10), %s1095_s20, 0 }
  0x51   : > { %737 = dma.done.wait (%p1100_p6), %s164_s19, 4096  }
  0x52   : > { %739 = vsyncadd (%p1100_p6), %s164_s19, 4294963200  ;;  %s486_s23 = sshll.u32 %s935_s30, 7  ;;  %s173_s3 = scalar_lea.sflag [#allocation6], %s935_s30 }
  0x53   : > { %s949_s5 = scalar_lea.vmem [#allocation5], %s486_s23 }
  0x54   : > { %741 = dma.done.wait (%p1100_p6), %s173_s3, 2048  }
  0x55   : > { %743 = vsyncadd (%p1100_p6), %s173_s3, 4294965248  ;;  %v205_v0 = vld [vmem:[%s941_s24] sm:$0xff]  ;;  %v206_v2 = vld [vmem:[%s941_s24 + $0x8] sm:$0xff]  ;;  %s972_s20 = scalar_lea.vmem [#allocation7], %s485_s4  ;;  %s495_s8 = sshll.u32 %s809_s13, 12 }
  0x56   : > { %v497_v1 = vld [vmem:[%s949_s5] sm:$0xff]   ;;  %v207_v5 = vld [vmem:[%s941_s24 + $0x10] sm:$0xff]  ;;  %v560_v6 = vld [vmem:[%s949_s5 + $0x8] sm:$0xff]   ;;  %s379_s17 = sshll.u32 %s972_s20, 4  ;;  %s1038_s25 = scalar_lea.hbm %s1091_s2, %s495_s8  ;;  %s1040_s17 = int_to_ptr.vmem [resolvable:$true] %s379_s17 }
  0x57   : > { %v498_v3 = vunpack.c.l.bf16 %v497_v1  ;;  %v499_v4 = vunpack.c.h.bf16 %v497_v1  ;;  %v208_v7 = vld [vmem:[%s941_s24 + $0x18] sm:$0xff]  ;;  %v502_v8 = vunpack.c.l.bf16 %v560_v6  ;;  %v503_v9 = vunpack.c.h.bf16 %v560_v6  ;;  %v209_v10 = vld [vmem:[%s941_s24 + $0x20] sm:$0xff]  ;;  %v561_v11 = vld [vmem:[%s949_s5 + $0x10] sm:$0xff]   ;;  %s366_s26 = scalar_lea.sflag [#allocation4], %s935_s30  ;;  %s692_s27 = scalar_lea.vmem %s1040_s17, 4096 }
  0x58   : > { %v210_v12 = vld [vmem:[%s941_s24 + $0x28] sm:$0xff]  ;;  %v506_v15 = vunpack.c.l.bf16 %v561_v11  ;;  %v507_v16 = vunpack.c.h.bf16 %v561_v11  ;;  %v211_v17 = vld [vmem:[%s941_s24 + $0x30] sm:$0xff]  ;;  %v562_v18 = vld [vmem:[%s949_s5 + $0x18] sm:$0xff]   ;;  %p693_p12 = scmp.ne.s32.totalorder %s1040_s17, %s692_s27  ;;  %p1101_p0 = scmp.ne.s32.totalorder %s1096_s21, 0 }
  0x59   : > { %v301_v13 = vmul.f32 %v498_v3, %v205_v0  ;;  %v302_v14 = vmul.f32 %v499_v4, %v206_v2  ;;  %v212_v19 = vld [vmem:[%s941_s24 + $0x38] sm:$0xff]  ;;  %v303_v20 = vmul.f32 %v502_v8, %v207_v5  ;;  %v304_v21 = vmul.f32 %v503_v9, %v208_v7  ;;  %v213_v24 = vld [vmem:[%s941_s24 + $0x40] sm:$0xff]  ;;  %v214_v26 = vld [vmem:[%s941_s24 + $0x48] sm:$0xff]  ;;  %s770_s29 = smov [#allocation7]  }
  0x5a   : > { %v510_v22 = vunpack.c.l.bf16 %v562_v18  ;;  %v511_v23 = vunpack.c.h.bf16 %v562_v18  ;;  %v563_v25 = vld [vmem:[%s949_s5 + $0x20] sm:$0xff]   ;;  %v305_v27 = vmul.f32 %v506_v15, %v209_v10  ;;  %v306_v28 = vmul.f32 %v507_v16, %v210_v12  ;;  %v215_v31 = vld [vmem:[%s941_s24 + $0x50] sm:$0xff]  ;;  %v564_v32 = vld [vmem:[%s949_s5 + $0x28] sm:$0xff]   ;;  %p694_p10 = pnand %p693_p12, %p1101_p0  ;;  %s696_s6 = sshll.u32 %s770_s29, 4  ;;  %s697_s6 = int_to_ptr.vmem [resolvable:$false] %s696_s6 }
  0x5b   : > { %333 = vst [vmem:[%s972_s20] sm:$0xff] %v301_v13  ;;  %334 = vst [vmem:[%s972_s20 + $0x8] sm:$0xff] %v302_v14  ;;  %v514_v29 = vunpack.c.l.bf16 %v563_v25  ;;  %v515_v30 = vunpack.c.h.bf16 %v563_v25  ;;  %v216_v33 = vld [vmem:[%s941_s24 + $0x58] sm:$0xff]  ;;  %v518_v36 = vunpack.c.l.bf16 %v564_v32  ;;  %v519_v37 = vunpack.c.h.bf16 %v564_v32  ;;  %v217_v38 = vld [vmem:[%s941_s24 + $0x60] sm:$0xff]  ;;  %s698_s7 = scalar_lea.vmem %s697_s6, 8192  ;;  %p699_p4 = scmp.lt.s32.totalorder %s1040_s17, %s697_s6 }
  0x5c   : > { %335 = vst [vmem:[%s972_s20 + $0x10] sm:$0xff] %v303_v20  ;;  %336 = vst [vmem:[%s972_s20 + $0x18] sm:$0xff] %v304_v21  ;;  %v307_v34 = vmul.f32 %v510_v22, %v211_v17  ;;  %v308_v35 = vmul.f32 %v511_v23, %v212_v19  ;;  %v565_v39 = vld [vmem:[%s949_s5 + $0x30] sm:$0xff]   ;;  %v218_v40 = vld [vmem:[%s941_s24 + $0x68] sm:$0xff]  ;;  %p695_p9 = pneg %p694_p10  ;;  %p700_p5 = scmp.lt.s32.totalorder %s698_s7, %s692_s27 }
  0x5d   : > { %337 = vst [vmem:[%s972_s20 + $0x20] sm:$0xff] %v305_v27  ;;  %338 = vst [vmem:[%s972_s20 + $0x28] sm:$0xff] %v306_v28  ;;  %v309_v41 = vmul.f32 %v514_v29, %v213_v24  ;;  %v310_v42 = vmul.f32 %v515_v30, %v214_v26  ;;  %v522_v43 = vunpack.c.l.bf16 %v565_v39  ;;  %v523_v44 = vunpack.c.h.bf16 %v565_v39  ;;  %v219_v45 = vld [vmem:[%s941_s24 + $0x70] sm:$0xff]  ;;  %v566_v46 = vld [vmem:[%s949_s5 + $0x38] sm:$0xff]  }
  0x5e   : > { %v220_v47 = vld [vmem:[%s941_s24 + $0x78] sm:$0xff]  ;;  %339 = vst [vmem:[%s972_s20 + $0x30] sm:$0xff] %v307_v34  ;;  %340 = vst [vmem:[%s972_s20 + $0x38] sm:$0xff] %v308_v35  ;;  %v311_v48 = vmul.f32 %v518_v36, %v215_v31  ;;  %v312_v49 = vmul.f32 %v519_v37, %v216_v33  ;;  %v526_v50 = vunpack.c.l.bf16 %v566_v46  ;;  %v527_v51 = vunpack.c.h.bf16 %v566_v46  ;;  %v221_v52 = vld [vmem:[%s941_s24 + $0x80] sm:$0xff]  ;;  %p701_p2 = por %p700_p5, %p699_p4 }
  0x5f   : > { %v567_v53 = vld [vmem:[%s949_s5 + $0x40] sm:$0xff]   ;;  %v222_v54 = vld [vmem:[%s941_s24 + $0x88] sm:$0xff]  ;;  %341 = vst [vmem:[%s972_s20 + $0x40] sm:$0xff] %v309_v41  ;;  %342 = vst [vmem:[%s972_s20 + $0x48] sm:$0xff] %v310_v42  ;;  %v313_v55 = vmul.f32 %v522_v43, %v217_v38  ;;  %v314_v56 = vmul.f32 %v523_v44, %v218_v40 }
  0x60   : > { %v530_v57 = vunpack.c.l.bf16 %v567_v53  ;;  %v531_v58 = vunpack.c.h.bf16 %v567_v53  ;;  %v223_v59 = vld [vmem:[%s941_s24 + $0x90] sm:$0xff]  ;;  %v568_v60 = vld [vmem:[%s949_s5 + $0x48] sm:$0xff]   ;;  %v224_v61 = vld [vmem:[%s941_s24 + $0x98] sm:$0xff]  ;;  %343 = vst [vmem:[%s972_s20 + $0x50] sm:$0xff] %v311_v48  ;;  %v315_v62 = vmul.f32 %v526_v50, %v219_v45  ;;  %v316_v63 = vmul.f32 %v527_v51, %v220_v47  ;;  %p702_p7 = pnand %p701_p2, %p695_p9 }
  0x61   : > { %344 = vst [vmem:[%s972_s20 + $0x58] sm:$0xff] %v312_v49  ;;  %v534_v0 = vunpack.c.l.bf16 %v568_v60  ;;  %v535_v1 = vunpack.c.h.bf16 %v568_v60  ;;  %v225_v2 = vld [vmem:[%s941_s24 + $0xa0] sm:$0xff]  ;;  %v569_v3 = vld [vmem:[%s949_s5 + $0x50] sm:$0xff]   ;;  %v226_v4 = vld [vmem:[%s941_s24 + $0xa8] sm:$0xff] }
  0x62   : > { %345 = vst [vmem:[%s972_s20 + $0x60] sm:$0xff] %v313_v55  ;;  %346 = vst [vmem:[%s972_s20 + $0x68] sm:$0xff] %v314_v56  ;;  %v317_v5 = vmul.f32 %v530_v57, %v221_v52  ;;  %v318_v6 = vmul.f32 %v531_v58, %v222_v54  ;;  %v538_v7 = vunpack.c.l.bf16 %v569_v3  ;;  %v539_v8 = vunpack.c.h.bf16 %v569_v3  ;;  %v227_v9 = vld [vmem:[%s941_s24 + $0xb0] sm:$0xff]  ;;  %v570_v10 = vld [vmem:[%s949_s5 + $0x58] sm:$0xff]  }
  0x63   : > { %v228_v11 = vld [vmem:[%s941_s24 + $0xb8] sm:$0xff]  ;;  %347 = vst [vmem:[%s972_s20 + $0x70] sm:$0xff] %v315_v62  ;;  %348 = vst [vmem:[%s972_s20 + $0x78] sm:$0xff] %v316_v63  ;;  %v319_v12 = vmul.f32 %v534_v0, %v223_v59  ;;  %v320_v13 = vmul.f32 %v535_v1, %v224_v61  ;;  %v542_v14 = vunpack.c.l.bf16 %v570_v10  ;;  %v543_v15 = vunpack.c.h.bf16 %v570_v10  ;;  %v229_v16 = vld [vmem:[%s941_s24 + $0xc0] sm:$0xff] }
  0x64   : > { %v571_v17 = vld [vmem:[%s949_s5 + $0x60] sm:$0xff]   ;;  %v230_v18 = vld [vmem:[%s941_s24 + $0xc8] sm:$0xff]  ;;  %349 = vst [vmem:[%s972_s20 + $0x80] sm:$0xff] %v317_v5  ;;  %350 = vst [vmem:[%s972_s20 + $0x88] sm:$0xff] %v318_v6  ;;  %v321_v19 = vmul.f32 %v538_v7, %v225_v2  ;;  %v322_v20 = vmul.f32 %v539_v8, %v226_v4 }
  0x65   : > { %v546_v21 = vunpack.c.l.bf16 %v571_v17  ;;  %v547_v22 = vunpack.c.h.bf16 %v571_v17  ;;  %v231_v23 = vld [vmem:[%s941_s24 + $0xd0] sm:$0xff]  ;;  %v572_v24 = vld [vmem:[%s949_s5 + $0x68] sm:$0xff]   ;;  %v232_v25 = vld [vmem:[%s941_s24 + $0xd8] sm:$0xff]  ;;  %351 = vst [vmem:[%s972_s20 + $0x90] sm:$0xff] %v319_v12  ;;  %v323_v26 = vmul.f32 %v542_v14, %v227_v9  ;;  %v324_v27 = vmul.f32 %v543_v15, %v228_v11 }
  0x66   : > { %352 = vst [vmem:[%s972_s20 + $0x98] sm:$0xff] %v320_v13  ;;  %v550_v28 = vunpack.c.l.bf16 %v572_v24  ;;  %v551_v29 = vunpack.c.h.bf16 %v572_v24  ;;  %v233_v30 = vld [vmem:[%s941_s24 + $0xe0] sm:$0xff]  ;;  %v573_v31 = vld [vmem:[%s949_s5 + $0x70] sm:$0xff]   ;;  %v234_v32 = vld [vmem:[%s941_s24 + $0xe8] sm:$0xff] }
  0x67   : > { %353 = vst [vmem:[%s972_s20 + $0xa0] sm:$0xff] %v321_v19  ;;  %354 = vst [vmem:[%s972_s20 + $0xa8] sm:$0xff] %v322_v20  ;;  %v325_v33 = vmul.f32 %v546_v21, %v229_v16  ;;  %v326_v34 = vmul.f32 %v547_v22, %v230_v18  ;;  %v554_v35 = vunpack.c.l.bf16 %v573_v31  ;;  %v555_v36 = vunpack.c.h.bf16 %v573_v31  ;;  %v235_v37 = vld [vmem:[%s941_s24 + $0xf0] sm:$0xff]  ;;  %v574_v38 = vld [vmem:[%s949_s5 + $0x78] sm:$0xff]  }
  0x68   : > { %v236_v39 = vld [vmem:[%s941_s24 + $0xf8] sm:$0xff]  ;;  %355 = vst [vmem:[%s972_s20 + $0xb0] sm:$0xff] %v323_v26  ;;  %356 = vst [vmem:[%s972_s20 + $0xb8] sm:$0xff] %v324_v27  ;;  %v327_v40 = vmul.f32 %v550_v28, %v231_v23  ;;  %v328_v41 = vmul.f32 %v551_v29, %v232_v25  ;;  %v558_v42 = vunpack.c.l.bf16 %v574_v38  ;;  %v559_v43 = vunpack.c.h.bf16 %v574_v38 }
  0x69   : > { %357 = vst [vmem:[%s972_s20 + $0xc0] sm:$0xff] %v325_v33  ;;  %358 = vst [vmem:[%s972_s20 + $0xc8] sm:$0xff] %v326_v34  ;;  %v329_v44 = vmul.f32 %v554_v35, %v233_v30  ;;  %v330_v45 = vmul.f32 %v555_v36, %v234_v32 }
  0x6a   : > { %359 = vst [vmem:[%s972_s20 + $0xd0] sm:$0xff] %v327_v40  ;;  %360 = vst [vmem:[%s972_s20 + $0xd8] sm:$0xff] %v328_v41  ;;  %v331_v46 = vmul.f32 %v558_v42, %v235_v37  ;;  %v332_v47 = vmul.f32 %v559_v43, %v236_v39 }
  0x6b   : > { %361 = vst [vmem:[%s972_s20 + $0xe0] sm:$0xff] %v329_v44  ;;  %362 = vst [vmem:[%s972_s20 + $0xe8] sm:$0xff] %v330_v45 }
  0x6c   : > { %363 = vst [vmem:[%s972_s20 + $0xf0] sm:$0xff] %v331_v46  ;;  %364 = vst [vmem:[%s972_s20 + $0xf8] sm:$0xff] %v332_v47 }
  0x6d   : > { %705 = shalt.err (!%p702_p7)
}
  0x6e   : > { %s706_s14 = scalar_lea.hbm %s1038_s25, 4096  ;;  %s710_s19 = scalar_lea.hbm %s1091_s2, 16384 }
  0x6f   : > { %p707_p11 = scmp.ne.s32.totalorder %s1038_s25, %s706_s14  ;;  %p711_p1 = scmp.lt.u32.totalorder %s1038_s25, %s1091_s2 }
  0x70   : > { %p712_p3 = scmp.lt.u32.totalorder %s710_s19, %s706_s14  ;;  %p714_p12 = scmp.lt.u32.totalorder %s706_s14, %s1038_s25 }
  0x71   : > { %p708_p8 = pnand %p707_p11, %p1101_p0 }
  0x72   : > { %p713_p6 = por %p712_p3, %p711_p1 }
  0x73   : > { %p709_p13 = pneg %p708_p8 }
  0x74   : > { %p715_p10 = por %p714_p12, %p713_p6 }
  0x76   : > { %p716_p9 = pnand %p715_p10, %p709_p13 }
  0x78   : > { %719 = shalt.err (!%p716_p9)
}
  0x79   : > { %s771_s3 = smov 128   ;;  %s772_s5 = smov 8  }
  0x7a   : > { %579 = dma.vmem_to_hbm [thread:$0]  (%p1101_p0), %s1040_s17, 4096, %s1038_s25, %s366_s26, %s771_s3, %s771_s3, %s772_s5  }
  0x7b PF: > { %p593_p4 = scmp.ge.s32.totalorder %s762_s12, 2  ;;  %s394_s20 = sand.u32 1, %s750_s9  }
  0x7c   : > { %p1102_p5 = scmp.ne.s32.totalorder %s1097_s22, 0  ;;  %s395_s8 = scalar_lea.sflag [#allocation4], %s394_s20 }
  0x7e   : > { %p589_p2 = pnand %p593_p4, %p1102_p5 }
  0x80   : > { %745 = dma.done.wait (!%p589_p2), %s395_s8, 4096  }
  0x81   : > { %747 = vsyncadd (!%p589_p2), %s395_s8, 4294963200  ;;  %p18_p7 = scmp.ge.s32.totalorder %s813_s15, 6   ;;  %s1103_s9 = smov %s754_s10 }
  0x82   : > { %s1104_s10 = smov %s758_s11  ;;  %s1105_s11 = smov %s825_s18 }
  0x83   : > { %s1106_s12 = smov %s813_s15  ;;  %20 = sbr.rel (!%p18_p7) target bundleno = 7 (0x7), region = 86 }
  0x8a   :  { %400 = vsyncpa [#allocation3], 1 }
  0x8b   :  { %402 = vsyncpa [#allocation3 + $0x1], 1 }
  0x8c   :  { %403 = vsyncpa [#allocation6], 1 }
  0x8d   :  { %405 = vsyncpa [#allocation6 + $0x1], 1 }
  0x8e   :  { %406 = vsyncpa [#allocation4], 1 }
  0x8f   :  { %408 = vsyncpa [#allocation4 + $0x1], 1 }

</bundles_post_ra>
